<compile_context>
chip_gen: v6e
topology: v6e:2x2x1
jax: 0.10.0
libtpu: 0.0.40
codegen_flags: <defaults>
</compile_context>

<pallas_src>
import functools

import jax
import jax.numpy as jnp
from jax.experimental import pallas as pl
from jax.experimental.pallas import tpu as pltpu


def _round_up(n, m):
    return ((n + m - 1) // m) * m


# ----------------------------------------------------------------------------
# Pallas kernel: whole MLP (2 hidden layers + fused actor/critic head) for one
# (TB, in_pad) batch tile.  The packed parameter slab is sliced with static,
# tile-aligned row/column ranges (free).
# ----------------------------------------------------------------------------
def _actor_critic_kernel(
    x_ref, p_ref, out_ref,
    *, in_pad, h1_pad, h2_pad, hidden_dim, half, n_assets,
):
    head_pad = out_ref.shape[1]

    # torch.nan_to_num(states, nan=0.0, posinf=0.0, neginf=0.0)
    x = x_ref[...]
    x = jnp.where(jnp.isfinite(x), x, 0.0)

    # Static, 128-aligned slices of the packed parameter slab.
    r_w2 = in_pad
    r_wh = in_pad + h1_pad
    r_vec = in_pad + h1_pad + h2_pad
    w1 = p_ref[0:in_pad, :h1_pad]
    w2 = p_ref[r_w2:r_w2 + h1_pad, :h2_pad]
    wh = p_ref[r_wh:r_wh + h2_pad, :head_pad]
    vec = p_ref[r_vec:r_vec + 8, :]          # (8, W) vector-param block
    b1, g1, be1 = vec[0:1, :h1_pad], vec[1:2, :h1_pad], vec[2:3, :h1_pad]
    b2, g2, be2 = vec[3:4, :h2_pad], vec[4:5, :h2_pad], vec[5:6, :h2_pad]
    bh = vec[6:7, :head_pad]

    def layernorm_relu(h, gamma, beta, n, eps=1e-5):
        # Single-pass (sum, sum-of-squares); padded columns are exactly 0 so
        # they contribute nothing.  Clamp variance (cancellation -> NaN guard).
        inv_n = 1.0 / n
        s = jnp.sum(h, axis=-1, keepdims=True)
        sq = jnp.sum(h * h, axis=-1, keepdims=True)
        mu = s * inv_n
        var = jnp.maximum(sq * inv_n - mu * mu, 0.0)
        hn = (h - mu) * jax.lax.rsqrt(var + eps) * gamma + beta
        return jnp.maximum(hn, 0.0)

    bf16 = jnp.bfloat16

    # base: Linear -> LayerNorm -> ReLU -> Linear -> LayerNorm -> ReLU
    h1 = jnp.dot(x.astype(bf16), w1.astype(bf16),
                 preferred_element_type=jnp.float32) + b1
    h1 = layernorm_relu(h1, g1, be1, float(hidden_dim))

    h2 = jnp.dot(h1.astype(bf16), w2.astype(bf16),
                 preferred_element_type=jnp.float32) + b2
    h2 = layernorm_relu(h2, g2, be2, float(half))

    # Fused actor+critic head: cols [0, n_assets) actor, col n_assets critic,
    # remaining lanes zero padding.
    head = jnp.dot(h2.astype(bf16), wh.astype(bf16),
                   preferred_element_type=jnp.float32) + bh

    # actor columns: softplus -> clamp(1e-4, 1e4) + 1e-4 ; critic/pad: raw.
    sp = jnp.maximum(head, 0.0) + jnp.log1p(jnp.exp(-jnp.abs(head)))
    conc = jnp.clip(sp, 1e-4, 1e4) + 1e-4
    col = jax.lax.broadcasted_iota(jnp.int32, head.shape, 1)
    out_ref[...] = jnp.where(col < n_assets, conc, head)


# ----------------------------------------------------------------------------
# Wrapper: pad batch + features, run a 1-D parallel grid over the batch, slice
# concentration / value out of the fused lane-dense head output.
# ----------------------------------------------------------------------------
def actor_critic_forward(states, slab, *, n_assets, n_features, hidden_dim, tb=8):
    if states.ndim == 3:
        x = states.reshape(states.shape[0], -1)
    elif states.ndim == 2:
        x = states.reshape(1, -1)
    else:
        raise ValueError("states must be 2-D or 3-D")
    x = x.astype(jnp.float32)

    batch = x.shape[0]
    input_dim = n_assets * n_features
    half = hidden_dim // 2
    in_pad = _round_up(input_dim, 128)
    h1_pad = _round_up(hidden_dim, 128)
    h2_pad = _round_up(half, 128)
    head_pad = _round_up(n_assets + 1, 128)

    # Batch tile: multiple of 8 (f32 sublane tile).  For real rollouts pick
    # TB as a multiple of 256 on v6e/v7x (2x256x256 MXU) or 128 on v5e.
    tb = max(8, _round_up(tb, 8))
    b_pad = _round_up(max(batch, tb), tb)

    xp = jnp.pad(x, ((0, b_pad - batch), (0, in_pad - input_dim)))

    grid_spec = pltpu.PrefetchScalarGridSpec(
        num_scalar_prefetch=0,
        grid=(b_pad // tb,),
        in_specs=[
            pl.BlockSpec((tb, in_pad), lambda i: (i, 0)),
            # Constant index_map -> parameter slab stays VMEM-resident.
            pl.BlockSpec(slab.shape, lambda i: (0, 0)),
        ],
        out_specs=pl.BlockSpec((tb, head_pad), lambda i: (i, 0)),
    )

    out = pl.pallas_call(
        functools.partial(
            _actor_critic_kernel,
            in_pad=in_pad, h1_pad=h1_pad, h2_pad=h2_pad,
            hidden_dim=hidden_dim, half=half, n_assets=n_assets,
        ),
        out_shape=jax.ShapeDtypeStruct((b_pad, head_pad), jnp.float32),
        grid_spec=grid_spec,
        compiler_params=pltpu.CompilerParams(dimension_semantics=("parallel",)),
    )(xp, slab)

    concentration = out[:batch, :n_assets]
    value = out[:batch, n_assets:n_assets + 1]
    # NOTE: the PyTorch fallback to ones_like on NaN/Inf concentration is not
    # reachable with sanitized finite inputs + the clamp, so it is not emitted.
    return concentration, value


# ----------------------------------------------------------------------------
# Deterministic parameter initialization (mirrors _init_weights):
#   Linear weights: kaiming_uniform_(fan_in, relu) -> U(-sqrt(6/fan_in), +)
#   Linear biases:  0.0   ;   LayerNorm: gamma=1, beta=0
# ----------------------------------------------------------------------------
def init_params(key, n_assets, n_features, hidden_dim=128):
    input_dim = n_assets * n_features
    half = hidden_dim // 2

    def kaiming_uniform(k, fan_in, fan_out):
        bound = jnp.sqrt(6.0 / fan_in)
        # sample as (out, in) like torch then transpose to (in, out)
        w = jax.random.uniform(
            k, (fan_out, fan_in), jnp.float32, minval=-bound, maxval=bound
        )
        return w.T

    k1, k2, k3, k4 = jax.random.split(key, 4)
    w1 = kaiming_uniform(k1, input_dim, hidden_dim)
    b1 = jnp.zeros((hidden_dim,), jnp.float32)
    g1 = jnp.ones((hidden_dim,), jnp.float32)
    be1 = jnp.zeros((hidden_dim,), jnp.float32)

    w2 = kaiming_uniform(k2, hidden_dim, half)
    b2 = jnp.zeros((half,), jnp.float32)
    g2 = jnp.ones((half,), jnp.float32)
    be2 = jnp.zeros((half,), jnp.float32)

    wa = kaiming_uniform(k3, half, n_assets)
    ba = jnp.zeros((n_assets,), jnp.float32)

    wc = kaiming_uniform(k4, half, 1)
    bc = jnp.zeros((1,), jnp.float32)

    return (w1, b1, g1, be1, w2, b2, g2, be2, wa, ba, wc, bc)


def pack_params(params, n_assets, n_features, hidden_dim):
    """Pack ALL parameters into a single zero-padded lane-dense (rows, 128k) slab.

    Row layout (all section heights are multiples of 128, so every in-kernel
    slice is tile-aligned):
      [0, in_pad)                         : w1  (input_dim, hidden_dim), padded
      [in_pad, in_pad+h1_pad)             : w2  (hidden_dim, half), padded
      [.., +h2_pad)                       : wh  = [wa | wc | 0]  fused head
      last 8 rows                         : b1,g1,be1,b2,g2,be2, fused head bias
    """
    (w1, b1, g1, be1, w2, b2, g2, be2, wa, ba, wc, bc) = params
    input_dim = n_assets * n_features
    half = hidden_dim // 2

    in_pad = _round_up(input_dim, 128)
    h1_pad = _round_up(hidden_dim, 128)
    h2_pad = _round_up(half, 128)
    head_pad = _round_up(n_assets + 1, 128)
    width = max(h1_pad, h2_pad, head_pad)
    rows = in_pad + h1_pad + h2_pad + 8

    slab = jnp.zeros((rows, width), jnp.float32)
    slab = slab.at[:input_dim, :hidden_dim].set(w1)

    r_w2 = in_pad
    slab = slab.at[r_w2:r_w2 + hidden_dim, :half].set(w2)

    r_wh = in_pad + h1_pad
    slab = slab.at[r_wh:r_wh + half, :n_assets].set(wa)
    slab = slab.at[r_wh:r_wh + half, n_assets:n_assets + 1].set(wc)

    r_vec = in_pad + h1_pad + h2_pad
    slab = slab.at[r_vec + 0, :hidden_dim].set(b1)
    slab = slab.at[r_vec + 1, :hidden_dim].set(g1)
    slab = slab.at[r_vec + 2, :hidden_dim].set(be1)
    slab = slab.at[r_vec + 3, :half].set(b2)
    slab = slab.at[r_vec + 4, :half].set(g2)
    slab = slab.at[r_vec + 5, :half].set(be2)
    slab = slab.at[r_vec + 6, :n_assets].set(ba)
    slab = slab.at[r_vec + 6, n_assets:n_assets + 1].set(bc)
    return slab


if __name__ == "__main__":
    # Small shapes consistent with the module: batch=2, n_assets=8, n_features=4,
    # hidden_dim=32 -> input_dim=32, half=16.
    batch, n_assets, n_features, hidden_dim = 2, 8, 4, 32

    key = jax.random.PRNGKey(0)
    k_params, k_states = jax.random.split(key)
    params = init_params(k_params, n_assets, n_features, hidden_dim)
    slab = pack_params(params, n_assets, n_features, hidden_dim)

    states = jax.random.normal(k_states, (batch, n_assets, n_features), jnp.float32)

    # TODO(synk): for real rollouts, batch many environments (B >> 2) and raise
    # tb to a multiple of 256 (v6e/v7x) or 128 (v5e); at B=2 runtime is
    # dominated by dispatch overhead, not the kernel.
    fwd = jax.jit(
        functools.partial(
            actor_critic_forward, slab=slab,
            n_assets=n_assets, n_features=n_features,
            hidden_dim=hidden_dim, tb=8,
        )
    )
    concentration, value = fwd(states)
    jax.block_until_ready((concentration, value))

    assert concentration.shape == (batch, n_assets)
    assert value.shape == (batch, 1)
    assert bool(jnp.all(concentration > 0.0))
    assert bool(jnp.all(jnp.isfinite(concentration))) and bool(jnp.all(jnp.isfinite(value)))

    print("KERNEL_OK")
</pallas_src>

<mosaic_0001>
module attributes {stable_mosaic.version = 11 : i64} {
  func.func @_actor_critic_kernel(%arg0: i32, %arg1: memref<8x128xf32, #tpu.memory_space<vmem>>, %arg2: memref<392x128xf32, #tpu.memory_space<vmem>>, %arg3: memref<8x128xf32, #tpu.memory_space<vmem>>) attributes {dimension_semantics = [#tpu.dimension_semantics<parallel>], iteration_bounds = array<i64: 1>, scalar_prefetch = 0 : i64, scratch_operands = 0 : i64, tpu.core_type = #tpu.core_type<tc>, window_params = [{transform_indices = @transform_0, window_bounds = array<i64: 8, 128>}, {pipeline_mode = #tpu.pipeline_mode<synchronous>, transform_indices = @transform_1, window_bounds = array<i64: 392, 128>}, {transform_indices = @transform_2, window_bounds = array<i64: 8, 128>}]} {
    %c0 = arith.constant 0 : index
    %c0_0 = arith.constant 0 : index
    %0 = vector.load %arg1[%c0, %c0_0] : memref<8x128xf32, #tpu.memory_space<vmem>>, vector<8x128xf32>
    %1 = tpu.weird %0 : vector<8x128xf32> -> vector<8x128xi1>
    %cst = arith.constant dense<true> : vector<8x128xi1>
    %2 = arith.xori %1, %cst : vector<8x128xi1>
    %cst_1 = arith.constant 0.000000e+00 : f32
    %3 = vector.broadcast %cst_1 : f32 to vector<8x128xf32>
    %4 = arith.select %2, %0, %3 : vector<8x128xi1>, vector<8x128xf32>
    %c0_2 = arith.constant 0 : index
    %c0_3 = arith.constant 0 : index
    %5 = vector.load %arg2[%c0_2, %c0_3] : memref<392x128xf32, #tpu.memory_space<vmem>>, vector<128x128xf32>
    %c128 = arith.constant 128 : index
    %c0_4 = arith.constant 0 : index
    %6 = vector.load %arg2[%c128, %c0_4] : memref<392x128xf32, #tpu.memory_space<vmem>>, vector<128x128xf32>
    %c256 = arith.constant 256 : index
    %c0_5 = arith.constant 0 : index
    %7 = vector.load %arg2[%c256, %c0_5] : memref<392x128xf32, #tpu.memory_space<vmem>>, vector<128x128xf32>
    %c384 = arith.constant 384 : index
    %c0_6 = arith.constant 0 : index
    %8 = vector.load %arg2[%c384, %c0_6] : memref<392x128xf32, #tpu.memory_space<vmem>>, vector<8x128xf32>
    %9 = vector.extract_strided_slice %8 {offsets = [0, 0], sizes = [1, 128], strides = [1, 1]} : vector<8x128xf32> to vector<1x128xf32>
    %10 = vector.extract_strided_slice %8 {offsets = [1, 0], sizes = [1, 128], strides = [1, 1]} : vector<8x128xf32> to vector<1x128xf32>
    %11 = vector.extract_strided_slice %8 {offsets = [2, 0], sizes = [1, 128], strides = [1, 1]} : vector<8x128xf32> to vector<1x128xf32>
    %12 = vector.extract_strided_slice %8 {offsets = [3, 0], sizes = [1, 128], strides = [1, 1]} : vector<8x128xf32> to vector<1x128xf32>
    %13 = vector.extract_strided_slice %8 {offsets = [4, 0], sizes = [1, 128], strides = [1, 1]} : vector<8x128xf32> to vector<1x128xf32>
    %14 = vector.extract_strided_slice %8 {offsets = [5, 0], sizes = [1, 128], strides = [1, 1]} : vector<8x128xf32> to vector<1x128xf32>
    %15 = vector.extract_strided_slice %8 {offsets = [6, 0], sizes = [1, 128], strides = [1, 1]} : vector<8x128xf32> to vector<1x128xf32>
    %16 = arith.truncf %4 : vector<8x128xf32> to vector<8x128xbf16>
    %17 = arith.truncf %5 : vector<128x128xf32> to vector<128x128xbf16>
    %cst_7 = arith.constant dense<0.000000e+00> : vector<8x128xf32>
    %18 = tpu.matmul %16, %17, %cst_7 {dimension_numbers = #tpu.dot_dimension_numbers<[1], [0], [0], [1], [0, 0, 1, 1], [], []>} : vector<8x128xbf16>, vector<128x128xbf16>, vector<8x128xf32> -> vector<8x128xf32>
    %19 = vector.broadcast %9 : vector<1x128xf32> to vector<8x128xf32>
    %20 = arith.addf %18, %19 : vector<8x128xf32>
    %cst_8 = arith.constant dense<0.000000e+00> : vector<8xf32>
    %21 = vector.multi_reduction <add>, %20, %cst_8 [1] : vector<8x128xf32> to vector<8xf32>
    %22 = vector.shape_cast %21 : vector<8xf32> to vector<8x1xf32>
    %23 = arith.mulf %20, %20 : vector<8x128xf32>
    %cst_9 = arith.constant dense<0.000000e+00> : vector<8xf32>
    %24 = vector.multi_reduction <add>, %23, %cst_9 [1] : vector<8x128xf32> to vector<8xf32>
    %25 = vector.shape_cast %24 : vector<8xf32> to vector<8x1xf32>
    %cst_10 = arith.constant 3.125000e-02 : f32
    %26 = vector.broadcast %cst_10 : f32 to vector<8x1xf32>
    %27 = arith.mulf %22, %26 : vector<8x1xf32>
    %cst_11 = arith.constant 3.125000e-02 : f32
    %28 = vector.broadcast %cst_11 : f32 to vector<8x1xf32>
    %29 = arith.mulf %25, %28 : vector<8x1xf32>
    %30 = arith.mulf %27, %27 : vector<8x1xf32>
    %31 = arith.subf %29, %30 : vector<8x1xf32>
    %cst_12 = arith.constant 0.000000e+00 : f32
    %32 = vector.broadcast %cst_12 : f32 to vector<8x1xf32>
    %33 = arith.maximumf %31, %32 : vector<8x1xf32>
    %34 = vector.broadcast %27 : vector<8x1xf32> to vector<8x128xf32>
    %35 = arith.subf %20, %34 : vector<8x128xf32>
    %cst_13 = arith.constant 9.99999974E-6 : f32
    %36 = vector.broadcast %cst_13 : f32 to vector<8x1xf32>
    %37 = arith.addf %33, %36 : vector<8x1xf32>
    %38 = math.rsqrt %37 : vector<8x1xf32>
    %39 = vector.broadcast %38 : vector<8x1xf32> to vector<8x128xf32>
    %40 = arith.mulf %35, %39 : vector<8x128xf32>
    %41 = vector.broadcast %10 : vector<1x128xf32> to vector<8x128xf32>
    %42 = arith.mulf %40, %41 : vector<8x128xf32>
    %43 = vector.broadcast %11 : vector<1x128xf32> to vector<8x128xf32>
    %44 = arith.addf %42, %43 : vector<8x128xf32>
    %cst_14 = arith.constant 0.000000e+00 : f32
    %45 = vector.broadcast %cst_14 : f32 to vector<8x128xf32>
    %46 = arith.maximumf %44, %45 : vector<8x128xf32>
    %47 = arith.truncf %46 : vector<8x128xf32> to vector<8x128xbf16>
    %48 = arith.truncf %6 : vector<128x128xf32> to vector<128x128xbf16>
    %cst_15 = arith.constant dense<0.000000e+00> : vector<8x128xf32>
    %49 = tpu.matmul %47, %48, %cst_15 {dimension_numbers = #tpu.dot_dimension_numbers<[1], [0], [0], [1], [0, 0, 1, 1], [], []>} : vector<8x128xbf16>, vector<128x128xbf16>, vector<8x128xf32> -> vector<8x128xf32>
    %50 = vector.broadcast %12 : vector<1x128xf32> to vector<8x128xf32>
    %51 = arith.addf %49, %50 : vector<8x128xf32>
    %cst_16 = arith.constant dense<0.000000e+00> : vector<8xf32>
    %52 = vector.multi_reduction <add>, %51, %cst_16 [1] : vector<8x128xf32> to vector<8xf32>
    %53 = vector.shape_cast %52 : vector<8xf32> to vector<8x1xf32>
    %54 = arith.mulf %51, %51 : vector<8x128xf32>
    %cst_17 = arith.constant dense<0.000000e+00> : vector<8xf32>
    %55 = vector.multi_reduction <add>, %54, %cst_17 [1] : vector<8x128xf32> to vector<8xf32>
    %56 = vector.shape_cast %55 : vector<8xf32> to vector<8x1xf32>
    %cst_18 = arith.constant 6.250000e-02 : f32
    %57 = vector.broadcast %cst_18 : f32 to vector<8x1xf32>
    %58 = arith.mulf %53, %57 : vector<8x1xf32>
    %cst_19 = arith.constant 6.250000e-02 : f32
    %59 = vector.broadcast %cst_19 : f32 to vector<8x1xf32>
    %60 = arith.mulf %56, %59 : vector<8x1xf32>
    %61 = arith.mulf %58, %58 : vector<8x1xf32>
    %62 = arith.subf %60, %61 : vector<8x1xf32>
    %cst_20 = arith.constant 0.000000e+00 : f32
    %63 = vector.broadcast %cst_20 : f32 to vector<8x1xf32>
    %64 = arith.maximumf %62, %63 : vector<8x1xf32>
    %65 = vector.broadcast %58 : vector<8x1xf32> to vector<8x128xf32>
    %66 = arith.subf %51, %65 : vector<8x128xf32>
    %cst_21 = arith.constant 9.99999974E-6 : f32
    %67 = vector.broadcast %cst_21 : f32 to vector<8x1xf32>
    %68 = arith.addf %64, %67 : vector<8x1xf32>
    %69 = math.rsqrt %68 : vector<8x1xf32>
    %70 = vector.broadcast %69 : vector<8x1xf32> to vector<8x128xf32>
    %71 = arith.mulf %66, %70 : vector<8x128xf32>
    %72 = vector.broadcast %13 : vector<1x128xf32> to vector<8x128xf32>
    %73 = arith.mulf %71, %72 : vector<8x128xf32>
    %74 = vector.broadcast %14 : vector<1x128xf32> to vector<8x128xf32>
    %75 = arith.addf %73, %74 : vector<8x128xf32>
    %cst_22 = arith.constant 0.000000e+00 : f32
    %76 = vector.broadcast %cst_22 : f32 to vector<8x128xf32>
    %77 = arith.maximumf %75, %76 : vector<8x128xf32>
    %78 = arith.truncf %77 : vector<8x128xf32> to vector<8x128xbf16>
    %79 = arith.truncf %7 : vector<128x128xf32> to vector<128x128xbf16>
    %cst_23 = arith.constant dense<0.000000e+00> : vector<8x128xf32>
    %80 = tpu.matmul %78, %79, %cst_23 {dimension_numbers = #tpu.dot_dimension_numbers<[1], [0], [0], [1], [0, 0, 1, 1], [], []>} : vector<8x128xbf16>, vector<128x128xbf16>, vector<8x128xf32> -> vector<8x128xf32>
    %81 = vector.broadcast %15 : vector<1x128xf32> to vector<8x128xf32>
    %82 = arith.addf %80, %81 : vector<8x128xf32>
    %cst_24 = arith.constant 0.000000e+00 : f32
    %83 = vector.broadcast %cst_24 : f32 to vector<8x128xf32>
    %84 = arith.maximumf %82, %83 : vector<8x128xf32>
    %85 = math.absf %82 : vector<8x128xf32>
    %cst_25 = arith.constant 0.000000e+00 : f32
    %86 = vector.broadcast %cst_25 : f32 to vector<8x128xf32>
    %87 = arith.subf %86, %85 : vector<8x128xf32>
    %88 = math.exp %87 : vector<8x128xf32>
    %89 = math.log1p %88 : vector<8x128xf32>
    %90 = arith.addf %84, %89 : vector<8x128xf32>
    %cst_26 = arith.constant 9.99999974E-5 : f32
    %cst_27 = arith.constant 1.000000e+04 : f32
    %91 = vector.broadcast %cst_26 : f32 to vector<8x128xf32>
    %92 = arith.maximumf %91, %90 : vector<8x128xf32>
    %93 = vector.broadcast %cst_27 : f32 to vector<8x128xf32>
    %94 = arith.minimumf %93, %92 : vector<8x128xf32>
    %cst_28 = arith.constant 9.99999974E-5 : f32
    %95 = vector.broadcast %cst_28 : f32 to vector<8x128xf32>
    %96 = arith.addf %94, %95 : vector<8x128xf32>
    %97 = tpu.iota {dimensions = array<i32: 1>} : vector<8x128xi32>
    %c8_i32 = arith.constant 8 : i32
    %98 = vector.broadcast %c8_i32 : i32 to vector<8x128xi32>
    %99 = arith.cmpi slt, %97, %98 : vector<8x128xi32>
    %100 = arith.select %99, %96, %82 : vector<8x128xi1>, vector<8x128xf32>
    %c0_29 = arith.constant 0 : index
    %c0_30 = arith.constant 0 : index
    %101 = vector.load %arg3[%c0_29, %c0_30] : memref<8x128xf32, #tpu.memory_space<vmem>>, vector<8x128xf32>
    tpu.vector_store %arg3[%c0_29, %c0_30], %100 {strides = array<i32>} : memref<8x128xf32, #tpu.memory_space<vmem>>, vector<8x128xf32>,
    return
  }
  func.func @transform_0(%arg0: i32) -> (i32, i32) {
    %c0_i32 = arith.constant 0 : i32
    %c0_i32_0 = arith.constant 0 : i32
    return %arg0, %c0_i32 : i32, i32
  }
  func.func @transform_1(%arg0: i32) -> (i32, i32) {
    %c0_i32 = arith.constant 0 : i32
    %c0_i32_0 = arith.constant 0 : i32
    %c0_i32_1 = arith.constant 0 : i32
    return %c0_i32, %c0_i32_0 : i32, i32
  }
  func.func @transform_2(%arg0: i32) -> (i32, i32) {
    %c0_i32 = arith.constant 0 : i32
    %c0_i32_0 = arith.constant 0 : i32
    return %arg0, %c0_i32 : i32, i32
  }
}

</mosaic_0001>

<bundles_post_ra>
// kernel: actor_critic_forward.1
= control target key start
LH: loop header
LB: loop body
LE: loop exit
PB: predicated region body
PF: predicated region fallthrough
CT: control target
= control target key end

     0   :  { %7 = vsyncpa [#allocation3], 0  ;;  %s442_s9 = smov [#allocation2]   ;;  %s522_s0 = inlined_call_operand.vmem [shape: f32[8,128], index: 0, kind: input, shape index: {}]   ;;  %s523_s1 = inlined_call_operand.hbm [shape: f32[392,128], index: 1, kind: input, shape index: {}]   ;;  %s524_s2 = inlined_call_operand.vmem [shape: f32[8,128], index: 2, kind: output, shape index: {}]  }
   0x1   :  { %s15_s10 = sshll.u32 %s442_s9, 4  ;;  %s16_s10 = int_to_ptr.vmem [resolvable:$true] %s15_s10 }
   0x2   :  { %s428_s11 = scalar_lea.vmem %s16_s10, 6272  ;;  %p433_p1 = scmp.lt.s32.totalorder %s16_s10, %s16_s10 }
   0x3   :  { %p429_p0 = scmp.ne.s32.totalorder %s16_s10, %s428_s11  ;;  %p434_p2 = scmp.lt.s32.totalorder %s428_s11, %s428_s11 }
   0x5   :  { %p435_p3 = por %p434_p2, %p433_p1 }
   0x7   :  { %p436_p4 = pnand %p435_p3, %p429_p0 }
   0x9   :  { %439 = shalt.err (!%p436_p4)
}
   0xa   :  { %s443_s12 = smov 128   ;;  %s444_s13 = smov 8  }
   0xb   :  { %21 = dma.hbm_to_vmem [thread:$0]  %s523_s1, 6272, %s16_s10, [#allocation3], %s443_s12, %s443_s12, %s444_s13  }
   0xc   :  { %440 = dma.done.wait [#allocation3], 6272  }
   0xd   :  { %441 = vsyncadd [#allocation3], 4294961024  ;;  %v445_v0 = vmov 0.0   ;;  %vm446_vm0 = vmmov 0   ;;  %v44_v1 = vld [vmem:[#allocation2 + $0x70] sm:$0xff]  ;;  %v45_v2 = vld [vmem:[#allocation2 + $0x78] sm:$0xff]  ;;  %v88_v27 = vlaneseq }
   0xe   :  { %346 = vmatprep.subr.bf16.mxu0 %v445_v0  ;;  %362 = vmatprep.mubr.msk.bf16.mxu0 %vm446_vm0, %v445_v0  ;;  %v42_v3 = vld [vmem:[#allocation2 + $0x60] sm:$0xff]  ;;  %v87_v4 = vpack.c.bf16 %v45_v2, %v44_v1  ;;  %v43_v5 = vld [vmem:[#allocation2 + $0x68] sm:$0xff]  ;;  %v40_v7 = vld [vmem:[#allocation2 + $0x50] sm:$0xff]  ;;  %vm447_vm2 = vmmov 1  }
   0xf   :  { %366 = vmatprep.subr.bf16.mxu1 %v445_v0  ;;  %382 = vmatprep.mubr.msk.bf16.mxu1 %vm446_vm0, %v445_v0  ;;  %v86_v6 = vpack.c.bf16 %v43_v5, %v42_v3  ;;  %v41_v8 = vld [vmem:[#allocation2 + $0x58] sm:$0xff]  ;;  %v38_v10 = vld [vmem:[#allocation2 + $0x40] sm:$0xff]  ;;  %v39_v11 = vld [vmem:[#allocation2 + $0x48] sm:$0xff]  ;;  %v486_v28 = vshrl.u32 %v88_v27, 7 }
  0x10   :  { %347 = vmatpush3.bf16.msra.mxu0 %v87_v4  ;;  %v85_v9 = vpack.c.bf16 %v41_v8, %v40_v7  ;;  %v84_v12 = vpack.c.bf16 %v39_v11, %v38_v10  ;;  %v36_v13 = vld [vmem:[#allocation2 + $0x30] sm:$0xff]  ;;  %v37_v14 = vld [vmem:[#allocation2 + $0x38] sm:$0xff]  ;;  %v34_v16 = vld [vmem:[#allocation2 + $0x20] sm:$0xff] }
  0x11   :  { %348 = vmatprep.subr.bf16.mxu0 %v445_v0  ;;  %v83_v15 = vpack.c.bf16 %v37_v14, %v36_v13  ;;  %v35_v17 = vld [vmem:[#allocation2 + $0x28] sm:$0xff]  ;;  %v32_v19 = vld [vmem:[#allocation2 + $0x10] sm:$0xff]  ;;  %v33_v20 = vld [vmem:[#allocation2 + $0x18] sm:$0xff]  ;;  %v90_v29 = vsub.s32 0, %v486_v28  ;;  %v148_v7 = vsub.s32 1, %v486_v28  ;;  %v153_v8 = vsub.s32 2, %v486_v28 }
  0x12   :  { %v82_v18 = vpack.c.bf16 %v35_v17, %v34_v16  ;;  %v26_v21 = vld [vmem:[%s522_s0] sm:$0xff]  ;;  %v81_v22 = vpack.c.bf16 %v33_v20, %v32_v19  ;;  %v31_v24 = vld [vmem:[#allocation2 + $0x8] sm:$0xff]  ;;  %v60_v38 = vld [vmem:[#allocation2 + $0xf0] sm:$0xff] }
  0x13   :  { %v30_v23 = vld [vmem:[#allocation2] sm:$0xff]  ;;  %vm27_vm1 = vweird.f32 %v26_v21  ;;  %v317_v26 = vpack.c.bf16 %v26_v21, %v26_v21  ;;  %v61_v39 = vld [vmem:[#allocation2 + $0xf8] sm:$0xff]  ;;  %v59_v42 = vld [vmem:[#allocation2 + $0xe8] sm:$0xff] }
  0x14   :  { %349 = vmatpush3.bf16.msra.mxu0 %v86_v6  ;;  %v80_v25 = vpack.c.bf16 %v31_v24, %v30_v23  ;;  %vm28_vm3 = vmxor %vm27_vm1, %vm447_vm2  ;;  %v489_v30 = vld [vmem:[#allocation2 + $0x180] sm:$0xff]  ;;  %v165_v40 = vpack.c.bf16 %v61_v39, %v60_v38  ;;  %v56_v44 = vld [vmem:[#allocation2 + $0xd0] sm:$0xff] }
  0x15   :  { %350 = vmatprep.subr.bf16.mxu0 %v445_v0  ;;  %vm316_vm4 = vmpackc.low %vm28_vm3, %vm28_vm3  ;;  %v91_v31 = vrot.slane %v489_v30, %v90_v29  ;;  %v58_v41 = vld [vmem:[#allocation2 + $0xe0] sm:$0xff]  ;;  %v57_v45 = vld [vmem:[#allocation2 + $0xd8] sm:$0xff]  ;;  %v149_v10 = vrot.slane %v489_v30, %v148_v7  ;;  %v154_v13 = vrot.slane %v489_v30, %v153_v8  ;;  %v246_v8 = vsub.s32 6, %v486_v28 }
  0x16   :  { %367 = vmatpush3.bf16.msra.mxu1 %v165_v40  ;;  %v164_v43 = vpack.c.bf16 %v59_v42, %v58_v41  ;;  %v163_v46 = vpack.c.bf16 %v57_v45, %v56_v44  ;;  %v54_v47 = vld [vmem:[#allocation2 + $0xc0] sm:$0xff]  ;;  %v55_v48 = vld [vmem:[#allocation2 + $0xc8] sm:$0xff]  ;;  %v52_v50 = vld [vmem:[#allocation2 + $0xb0] sm:$0xff] }
  0x17   :  { %368 = vmatprep.subr.bf16.mxu1 %v445_v0  ;;  %v162_v49 = vpack.c.bf16 %v55_v48, %v54_v47  ;;  %v53_v51 = vld [vmem:[#allocation2 + $0xb8] sm:$0xff]  ;;  %v50_v53 = vld [vmem:[#allocation2 + $0xa0] sm:$0xff]  ;;  %v51_v54 = vld [vmem:[#allocation2 + $0xa8] sm:$0xff] }
  0x18   :  { %351 = vmatpush3.bf16.msra.mxu0 %v85_v9  ;;  %v161_v52 = vpack.c.bf16 %v53_v51, %v52_v50  ;;  %v160_v55 = vpack.c.bf16 %v51_v54, %v50_v53  ;;  %v48_v56 = vld [vmem:[#allocation2 + $0x90] sm:$0xff]  ;;  %v49_v57 = vld [vmem:[#allocation2 + $0x98] sm:$0xff]  ;;  %v46_v59 = vld [vmem:[#allocation2 + $0x80] sm:$0xff] }
  0x19   :  { %352 = vmatprep.subr.bf16.mxu0 %v445_v0  ;;  %v159_v58 = vpack.c.bf16 %v49_v57, %v48_v56  ;;  %v47_v60 = vld [vmem:[#allocation2 + $0x88] sm:$0xff]  ;;  %v77_v29 = vld [vmem:[#allocation2 + $0x178] sm:$0xff]  ;;  %v70_v38 = vld [vmem:[#allocation2 + $0x140] sm:$0xff] }
  0x1a   :  { %369 = vmatpush3.bf16.msra.mxu1 %v164_v43  ;;  %v158_v61 = vpack.c.bf16 %v47_v60, %v46_v59  ;;  %v71_v39 = vld [vmem:[#allocation2 + $0x148] sm:$0xff]  ;;  %v68_v41 = vld [vmem:[#allocation2 + $0x130] sm:$0xff]  ;;  %v69_v42 = vld [vmem:[#allocation2 + $0x138] sm:$0xff] }
  0x1b   :  { %370 = vmatprep.subr.bf16.mxu1 %v445_v0  ;;  %v240_v40 = vpack.c.bf16 %v71_v39, %v70_v38  ;;  %v239_v43 = vpack.c.bf16 %v69_v42, %v68_v41  ;;  %v66_v44 = vld [vmem:[#allocation2 + $0x120] sm:$0xff]  ;;  %v67_v45 = vld [vmem:[#allocation2 + $0x128] sm:$0xff]  ;;  %v64_v47 = vld [vmem:[#allocation2 + $0x110] sm:$0xff] }
  0x1c   :  { %353 = vmatpush3.bf16.msra.mxu0 %v84_v12  ;;  %v65_v48 = vld [vmem:[#allocation2 + $0x118] sm:$0xff]  ;;  %v62_v50 = vld [vmem:[#allocation2 + $0x100] sm:$0xff]  ;;  %v63_v51 = vld [vmem:[#allocation2 + $0x108] sm:$0xff] }
  0x1d   :  { %354 = vmatprep.subr.bf16.mxu0 %v445_v0 }
  0x1e   :  { %371 = vmatpush3.bf16.msra.mxu1 %v163_v46  ;;  %v238_v46 = vpack.c.bf16 %v67_v45, %v66_v44 }
  0x1f   :  { %372 = vmatprep.subr.bf16.mxu1 %v445_v0 }
  0x20   :  { %355 = vmatpush3.bf16.msra.mxu0 %v83_v15 }
  0x21   :  { %356 = vmatprep.subr.bf16.mxu0 %v445_v0 }
  0x22   :  { %373 = vmatpush3.bf16.msra.mxu1 %v162_v49  ;;  %v237_v49 = vpack.c.bf16 %v65_v48, %v64_v47 }
  0x23   :  { %374 = vmatprep.subr.bf16.mxu1 %v445_v0 }
  0x24   :  { %357 = vmatpush3.bf16.msra.mxu0 %v82_v18  ;;  %v168_v18 = vsub.s32 3, %v486_v28 }
  0x25   :  { %358 = vmatprep.subr.bf16.mxu0 %v445_v0 }
  0x26   :  { %375 = vmatpush3.bf16.msra.mxu1 %v161_v52  ;;  %v169_v19 = vrot.slane %v489_v30, %v168_v18  ;;  %v236_v52 = vpack.c.bf16 %v63_v51, %v62_v50 }
  0x27   :  { %376 = vmatprep.subr.bf16.mxu1 %v445_v0 }
  0x28   :  { %359 = vmatpush3.bf16.msra.mxu0 %v81_v22 }
  0x29   :  { %360 = vmatprep.subr.bf16.mxu0 %v445_v0 }
  0x2a   :  { %377 = vmatpush3.bf16.msra.mxu1 %v160_v55 }
  0x2b   :  { %378 = vmatprep.subr.bf16.mxu1 %v445_v0 }
  0x2c   :  { %361 = vmatpush3.bf16.msra.mxu0 %v80_v25 }
  0x2d   :  { %386 = vmatprep.subr.bf16.mxu0 %v445_v0 }
  0x2e   :  { %379 = vmatpush3.bf16.msra.mxu1 %v159_v58 }
  0x2f   :  { %363 = vmatmul.mubr.msk.bf16.vlgmr.msra.gmra.mxu0 %vm316_vm4, %v317_v26  ;;  %380 = vmatprep.subr.bf16.mxu1 %v445_v0  ;;  %v76_v26 = vld [vmem:[#allocation2 + $0x170] sm:$0xff] }
  0x30   :  { %402 = vmatprep.mubr.msk.bf16.mxu0 %vm446_vm0, %v445_v0 }
  0x32   :  { %381 = vmatpush3.bf16.msra.mxu1 %v158_v61  ;;  %v226_v61 = vsub.s32 4, %v486_v28 }
  0xef   :  { %v126_v32 = vpop.f32.mrf.mxu0 }
  0xf0   :  { %v127_v33 = vadd.f32 %v126_v32, %v91_v31  ;;  %v243_v31 = vpack.c.bf16 %v77_v29, %v76_v26  ;;  %v74_v32 = vld [vmem:[#allocation2 + $0x160] sm:$0xff]  ;;  %v307_v29 = vand.u32 127, %v88_v27 }
  0xf1   :  { %v364_v34 = vpop.f32.mrf.mxu0 }
  0xf2   :  { %132 = vadd.xlane.f32.xlu0 %v127_v33  ;;  %v134_v36 = vmul.f32 %v127_v33, %v127_v33  ;;  %387 = vmatpush3.bf16.msra.mxu0 %v243_v31  ;;  %vm308_vm6 = vcmp.lt.s32.totalorder %v307_v29, 8 }
  0xf3   :  { %v129_v35 = vpop.f32.mrf.mxu0  ;;  %388 = vmatprep.subr.bf16.mxu0 %v445_v0 }
  0xf4   :  { %v72_v35 = vld [vmem:[#allocation2 + $0x150] sm:$0xff] }
  0xf5   :  { %v365_v37 = vpop.f32.mrf.mxu0 }
  0xf6   :  { %135 = vadd.xlane.f32.xlu0 %v134_v36  ;;  %v73_v36 = vld [vmem:[#allocation2 + $0x158] sm:$0xff] }
  0xf7   :  { %v241_v37 = vpack.c.bf16 %v73_v36, %v72_v35 }
 0x17b   :  { %v133_v62 = vpop.xlane.xlu0 %132 }
 0x17c   :  { %v137_v63 = vmul.f32 0.03125, %v133_v62  ;;  %v231_v62 = vsub.s32 5, %v486_v28 }
 0x17e   :  { %v139_v2 = vmul.f32 %v137_v63, %v137_v63  ;;  %v142_v9 = vsub.f32 %v127_v33, %v137_v63  ;;  %v75_v33 = vld [vmem:[#allocation2 + $0x168] sm:$0xff] }
 0x17f   :  { %v136_v1 = vpop.xlane.xlu0 %135  ;;  %v242_v34 = vpack.c.bf16 %v75_v33, %v74_v32 }
 0x180   :  { %v138_v3 = vmul.f32 0.03125, %v136_v1  ;;  %v227_v1 = vrot.slane %v489_v30, %v226_v61 }
 0x181   :  { %389 = vmatpush3.bf16.msra.mxu0 %v242_v34 }
 0x182   :  { %v140_v4 = vsub.f32 %v138_v3, %v139_v2  ;;  %390 = vmatprep.subr.bf16.mxu0 %v445_v0 }
 0x184   :  { %v141_v5 = vmax.f32 %v140_v4, 0.0 }
 0x185   :  { %391 = vmatpush3.bf16.msra.mxu0 %v241_v37 }
 0x186   :  { %v143_v6 = vadd.f32 1e-05, %v141_v5  ;;  %392 = vmatprep.subr.bf16.mxu0 %v445_v0 }
 0x188   :  { %412 = vrsqrt.f32 %v143_v6 }
 0x189   :  { %393 = vmatpush3.bf16.msra.mxu0 %v240_v40 }
 0x18a   :  { %394 = vmatprep.subr.bf16.mxu0 %v445_v0 }
 0x18d   :  { %395 = vmatpush3.bf16.msra.mxu0 %v239_v43 }
 0x18e   :  { %396 = vmatprep.subr.bf16.mxu0 %v445_v0 }
 0x191   :  { %397 = vmatpush3.bf16.msra.mxu0 %v238_v46 }
 0x192   :  { %398 = vmatprep.subr.bf16.mxu0 %v445_v0 }
 0x195   :  { %v413_v11 = vpop.eup %412  ;;  %399 = vmatpush3.bf16.msra.mxu0 %v237_v49 }
 0x196   :  { %v145_v12 = vmul.f32 %v413_v11, %v142_v9  ;;  %400 = vmatprep.subr.bf16.mxu0 %v445_v0  ;;  %v232_v0 = vrot.slane %v489_v30, %v231_v62  ;;  %v247_v9 = vrot.slane %v489_v30, %v246_v8 }
 0x198   :  { %v150_v14 = vmul.f32 %v149_v10, %v145_v12 }
 0x199   :  { %401 = vmatpush3.bf16.msra.mxu0 %v236_v52 }
 0x19a   :  { %v155_v15 = vadd.f32 %v154_v13, %v150_v14 }
 0x19c   :  { %v156_v16 = vmax.f32 %v155_v15, 0.0 }
 0x19e   :  { %v157_v17 = vpack.c.bf16 %v156_v16, %v156_v16 }
 0x1a0   :  { %383 = vmatmul.mubr.bf16.vlgmr.msra.gmra.mxu1 %v157_v17 }
 0x260   :  { %v204_v20 = vpop.f32.mrf.mxu1 }
 0x261   :  { %v205_v21 = vadd.f32 %v204_v20, %v169_v19 }
 0x262   :  { %v384_v22 = vpop.f32.mrf.mxu1 }
 0x263   :  { %210 = vadd.xlane.f32.xlu1 %v205_v21  ;;  %v212_v24 = vmul.f32 %v205_v21, %v205_v21 }
 0x264   :  { %v207_v23 = vpop.f32.mrf.mxu1 }
 0x266   :  { %v385_v25 = vpop.f32.mrf.mxu1 }
 0x267   :  { %213 = vadd.xlane.f32.xlu1 %v212_v24 }
 0x2ec   :  { %v211_v53 = vpop.xlane.xlu1 %210 }
 0x2ed   :  { %v215_v54 = vmul.f32 0.0625, %v211_v53 }
 0x2ef   :  { %v217_v56 = vmul.f32 %v215_v54, %v215_v54  ;;  %v220_v63 = vsub.f32 %v205_v21, %v215_v54 }
 0x2f0   :  { %v214_v55 = vpop.xlane.xlu1 %213 }
 0x2f1   :  { %v216_v57 = vmul.f32 0.0625, %v214_v55 }
 0x2f3   :  { %v218_v58 = vsub.f32 %v216_v57, %v217_v56 }
 0x2f5   :  { %v219_v59 = vmax.f32 %v218_v58, 0.0 }
 0x2f7   :  { %v221_v60 = vadd.f32 1e-05, %v219_v59 }
 0x2f9   :  { %414 = vrsqrt.f32 %v221_v60 }
 0x306   :  { %v415_v2 = vpop.eup %414 }
 0x307   :  { %v223_v3 = vmul.f32 %v415_v2, %v220_v63 }
 0x309   :  { %v228_v4 = vmul.f32 %v227_v1, %v223_v3 }
 0x30b   :  { %v233_v5 = vadd.f32 %v232_v0, %v228_v4 }
 0x30d   :  { %v234_v6 = vmax.f32 %v233_v5, 0.0 }
 0x30f   :  { %v235_v7 = vpack.c.bf16 %v234_v6, %v234_v6 }
 0x311   :  { %403 = vmatmul.mubr.bf16.vlgmr.msra.gmra.mxu0 %v235_v7 }
 0x3d1   :  { %v282_v10 = vpop.f32.mrf.mxu0 }
 0x3d2   :  { %v283_v11 = vadd.f32 %v282_v10, %v247_v9 }
 0x3d3   :  { %v404_v12 = vpop.f32.mrf.mxu0 }
 0x3d4   :  { %v289_v13 = vand.u32 2147483647, %v283_v11  ;;  %v288_v25 = vmax.f32 %v283_v11, 0.0 }
 0x3d5   :  { %v285_v14 = vpop.f32.mrf.mxu0 }
 0x3d6   :  { %v290_v15 = vsub.f32 0.0, %v289_v13 }
 0x3d7   :  { %v405_v16 = vpop.f32.mrf.mxu0 }
 0x3d8   :  { %v291_v17 = vmul.f32 1.442695, %v290_v15 }
 0x3da   :  { %416 = vpow2.f32 %v291_v17 }
 0x3e7   :  { %v417_v18 = vpop.eup %416 }
 0x3e8   :  { %v293_v19 = vadd.f32 1.0, %v417_v18  ;;  %v296_v20 = vmul.f32 -0.5, %v417_v18  ;;  %v299_v22 = vand.u32 2147483647, %v417_v18 }
 0x3ea   :  { %418 = vlog2.f32 %v293_v19  ;;  %v297_v21 = vadd.f32 1.0, %v296_v20  ;;  %vm300_vm5 = vcmp.lt.f32.partialorder %v299_v22, 0.0004427343 }
 0x3ec   :  { %v298_v28 = vmul.f32 %v417_v18, %v297_v21 }
 0x3f7   :  { %v419_v23 = vpop.eup %418 }
 0x3f8   :  { %v295_v24 = vmul.f32 0.6931472, %v419_v23 }
 0x3fa   :  { %v301_v30 = vsel %vm300_vm5, %v298_v28, %v295_v24 }
 0x3fb   :  { %v302_v26 = vadd.f32 %v301_v30, %v288_v25 }
 0x3fd   :  { %v303_v31 = vmax.f32 %v302_v26, 0.0001 }
 0x3ff   :  { %v304_v32 = vmin.f32 %v303_v31, 10000.0 }
 0x401   :  { %v305_v33 = vadd.f32 0.0001, %v304_v32 }
 0x403   :  { %v309_v34 = vsel %vm308_vm6, %v305_v33, %v283_v11 }
 0x404   :  { %310 = vst [vmem:[%s524_s2] sm:$0xff] %v309_v34 }
 0x405   :  { %315 = vsyncpa [#allocation3], 1 }

</bundles_post_ra>
